<compile_context>
chip_gen: v7x
topology: tpu7x:2x2x1
jax: 0.10.0
libtpu: 0.0.40
codegen_flags: <defaults>
</compile_context>

<pallas_src>
import jax
import jax.numpy as jnp
from jax.experimental import pallas as pl
from jax.experimental.pallas import tpu as pltpu


def conv_pool_kernel(x_ref, cw_ref, cb_ref, o_ref):
    # x_ref : (BB, S, H) bf16   (a tile of BB batch elements)
    # cw_ref: (K, H, C_out) bf16
    # cb_ref: (1, C_out) f32
    # o_ref : (BB, 1, C_out) f32 (max-pooled conv features per batch element)
    BB, S, H = x_ref.shape
    K, _, C_out = cw_ref.shape
    L = S - K + 1          # 'valid' conv output length
    BS = BB * S

    # Collapse (BB, S) into one sublane axis so each conv tap is a single big
    # (BB*S, H) @ (H, C_out) MXU matmul instead of BB small ones.  Row-major
    # collapse of leading dims (trailing dim unchanged) is layout-free when
    # S % 8 == 0 (true for BERT sequence lengths); otherwise Mosaic inserts a copy.
    x = x_ref[...].reshape(BS, H)     # bf16, fed straight to the MXU

    # conv1d: acc[t] = bias + sum_k x[t+k] @ w[k].
    # The tap offset is applied by rotating the f32 partial result on the sublane
    # axis (XLU slot -> overlaps with MXU/VPU), avoiding misaligned sublane slices.
    # Rows that wrap across sequence/tile boundaries are masked out before the max.
    acc = cb_ref[...].astype(jnp.float32)                  # (1, C_out), broadcasts
    for k in range(K):                                     # static unroll, K is small
        pk = jnp.dot(x, cw_ref[k], preferred_element_type=jnp.float32)  # (BS, C_out) f32
        if k:
            pk = pltpu.roll(pk, shift=BS - k, axis=0)      # rolled[t] = pk[t + k]
        acc = acc + pk

    # LeakyReLU (default negative_slope = 0.01), f32 on the VPU.
    act = jnp.where(acc > 0, acc, 0.01 * acc)

    # Mask the K-1 invalid (wrapped) time rows of every sequence, then max over time.
    t_in_seq = jax.lax.broadcasted_iota(jnp.int32, (BB, S, 1), 1)
    act = jnp.where(t_in_seq < L, act.reshape(BB, S, C_out), -jnp.inf)

    # Dropout: eval mode -> identity.
    o_ref[...] = jnp.max(act, axis=1, keepdims=True).astype(o_ref.dtype)


def _pick_batch_block(B, S, H, C_out, K, vmem_budget=32 * 1024 * 1024):
    """Largest divisor of B (capped at 8 for pipelining) whose tile fits the VMEM budget."""
    per_b = 2 * (S * H * 2) + 3 * (S * C_out * 4)     # dbl-buffered bf16 x + f32 partials
    fixed = 2 * (K * H * C_out * 2 + C_out * 4)       # resident conv weights + bias
    cap = max(1, (vmem_budget - fixed) // per_b)
    cap = min(cap, 8)                                  # keep >=2 grid steps for large B
    bb = 1
    for d in range(1, B + 1):
        if B % d == 0 and d <= cap:
            bb = d
    return bb


def cnn_bert_head(x, conv_w, conv_b, cls_w, cls_b):
    """x: (B,S,H) bert last_hidden_state.  conv_w: (K,H,C_out).  conv_b: (1,C_out).
       cls_w: (C_out,n_class).  cls_b: (1,n_class).  Returns (B, n_class) f32 logits."""
    B, S, H = x.shape
    K, _, C_out = conv_w.shape

    # bf16 matmul operands (halves HBM/VMEM traffic, 2x MXU rate); f32 accumulation
    # happens inside the kernel via preferred_element_type.
    x_bf = x.astype(jnp.bfloat16)
    cw_bf = conv_w.astype(jnp.bfloat16)
    cb_f32 = conv_b.astype(jnp.float32)

    BB = _pick_batch_block(B, S, H, C_out, K)

    pooled = pl.pallas_call(
        conv_pool_kernel,
        out_shape=jax.ShapeDtypeStruct((B, 1, C_out), jnp.float32),
        grid_spec=pltpu.PrefetchScalarGridSpec(
            num_scalar_prefetch=0,
            grid=(B // BB,),   # BB batch elements per grid step; double-buffered by Pallas
            in_specs=[
                pl.BlockSpec((BB, S, H), lambda b: (b, 0, 0)),      # activation tile
                pl.BlockSpec((K, H, C_out), lambda b: (0, 0, 0)),   # conv_w, VMEM-resident
                pl.BlockSpec((1, C_out), lambda b: (0, 0)),         # conv_b, VMEM-resident
            ],
            # Trailing (1, C_out) block dims equal the full array dims -> any BB is legal,
            # and 256 lanes keeps the store unmasked / lane-dense.
            out_specs=pl.BlockSpec((BB, 1, C_out), lambda b: (b, 0, 0)),
        ),
        compiler_params=pltpu.CompilerParams(
            dimension_semantics=("parallel",),        # independent batch tiles (megacore/v7x)
            vmem_limit_bytes=48 * 1024 * 1024,        # under v7x 64 MiB physical per TC
        ),
    )(x_bf, cw_bf, cb_f32)

    pooled = pooled.reshape(B, C_out)  # (B, 256), lane-dense

    # classifier Linear(256 -> n_class): n_class=4 is 4/128 lanes -> kept outside the
    # kernel (trivial GEMV for XLA) so the kernel store stays unmasked/lane-dense.
    logits = pooled @ cls_w.astype(jnp.float32) + cls_b.astype(jnp.float32)
    return logits


def _reference(x, conv_w, conv_b, cls_w, cls_b):
    # Same precision path as the kernel: bf16 matmul inputs, f32 accumulation.
    x_bf = x.astype(jnp.bfloat16)
    w_bf = conv_w.astype(jnp.bfloat16)
    K = conv_w.shape[0]
    L = x.shape[1] - K + 1
    acc = conv_b[None, :, :].astype(jnp.float32)
    for k in range(K):
        acc = acc + jnp.einsum('blh,hc->blc', x_bf[:, k:k + L, :], w_bf[k],
                               preferred_element_type=jnp.float32)
    act = jnp.where(acc > 0, acc, 0.01 * acc)
    pooled = jnp.max(act, axis=1)
    return pooled @ cls_w.astype(jnp.float32) + cls_b.astype(jnp.float32)


if __name__ == "__main__":
    # Small shapes consistent with the module: classifier is Linear(256, n_class),
    # so output_channels must be 256.
    B, S, H = 2, 16, 32        # batch, seq len, bert hidden size
    K = 3                      # conv kernel_size
    C_OUT = 256                # output_channels (matches classifier in_features)
    N_CLASS = 4

    key = jax.random.PRNGKey(0)
    kx, kcw, kcb, klw, klb = jax.random.split(key, 5)

    # Deterministic "BERT last_hidden_state"
    x = jax.random.normal(kx, (B, S, H), dtype=jnp.float32)

    # Conv1d params (PyTorch-style uniform init bounds), stored as (K, H, C_out)
    conv_bound = 1.0 / (H * K) ** 0.5
    conv_w = jax.random.uniform(kcw, (K, H, C_OUT), jnp.float32, -conv_bound, conv_bound)
    conv_b = jax.random.uniform(kcb, (1, C_OUT), jnp.float32, -conv_bound, conv_bound)

    # Classifier Linear(256 -> n_class), stored transposed as (C_out, n_class)
    cls_bound = 1.0 / C_OUT ** 0.5
    cls_w = jax.random.uniform(klw, (C_OUT, N_CLASS), jnp.float32, -cls_bound, cls_bound)
    cls_b = jax.random.uniform(klb, (1, N_CLASS), jnp.float32, -cls_bound, cls_bound)

    head = jax.jit(cnn_bert_head)
    logits = jax.block_until_ready(head(x, conv_w, conv_b, cls_w, cls_b))

    ref = _reference(x, conv_w, conv_b, cls_w, cls_b)
    assert logits.shape == (B, N_CLASS)
    assert jnp.allclose(logits, ref, atol=1e-3, rtol=1e-3), (
        f"max abs err {jnp.max(jnp.abs(logits - ref))}")
    print("KERNEL_OK")
</pallas_src>

<mosaic_0001>
module attributes {stable_mosaic.version = 11 : i64} {
  func.func @conv_pool_kernel(%arg0: i32, %arg1: memref<2x16x32xbf16, #tpu.memory_space<vmem>>, %arg2: memref<3x32x256xbf16, #tpu.memory_space<vmem>>, %arg3: memref<1x256xf32, #tpu.memory_space<vmem>>, %arg4: memref<2x1x256xf32, #tpu.memory_space<vmem>>) attributes {dimension_semantics = [#tpu.dimension_semantics<parallel>], iteration_bounds = array<i64: 1>, scalar_prefetch = 0 : i64, scratch_operands = 0 : i64, tpu.core_type = #tpu.core_type<tc>, window_params = [{transform_indices = @transform_0, window_bounds = array<i64: 2, 16, 32>}, {pipeline_mode = #tpu.pipeline_mode<synchronous>, transform_indices = @transform_1, window_bounds = array<i64: 3, 32, 256>}, {pipeline_mode = #tpu.pipeline_mode<synchronous>, transform_indices = @transform_2, window_bounds = array<i64: 1, 256>}, {transform_indices = @transform_3, window_bounds = array<i64: 2, 1, 256>}]} {
    %c0 = arith.constant 0 : index
    %c0_0 = arith.constant 0 : index
    %c0_1 = arith.constant 0 : index
    %0 = vector.load %arg1[%c0, %c0_0, %c0_1] : memref<2x16x32xbf16, #tpu.memory_space<vmem>>, vector<2x16x32xbf16>
    %1 = vector.shape_cast %0 : vector<2x16x32xbf16> to vector<32x32xbf16>
    %c0_2 = arith.constant 0 : index
    %c0_3 = arith.constant 0 : index
    %2 = vector.load %arg3[%c0_2, %c0_3] : memref<1x256xf32, #tpu.memory_space<vmem>>, vector<1x256xf32>
    %c0_4 = arith.constant 0 : index
    %c0_5 = arith.constant 0 : index
    %c0_6 = arith.constant 0 : index
    %3 = vector.load %arg2[%c0_4, %c0_5, %c0_6] : memref<3x32x256xbf16, #tpu.memory_space<vmem>>, vector<1x32x256xbf16>
    %4 = vector.shape_cast %3 : vector<1x32x256xbf16> to vector<32x256xbf16>
    %cst = arith.constant dense<0.000000e+00> : vector<32x256xf32>
    %5 = tpu.matmul %1, %4, %cst {dimension_numbers = #tpu.dot_dimension_numbers<[1], [0], [0], [1], [0, 0, 1, 1], [], []>} : vector<32x32xbf16>, vector<32x256xbf16>, vector<32x256xf32> -> vector<32x256xf32>
    %6 = vector.broadcast %2 : vector<1x256xf32> to vector<32x256xf32>
    %7 = arith.addf %6, %5 : vector<32x256xf32>
    %c1 = arith.constant 1 : index
    %c0_7 = arith.constant 0 : index
    %c0_8 = arith.constant 0 : index
    %8 = vector.load %arg2[%c1, %c0_7, %c0_8] : memref<3x32x256xbf16, #tpu.memory_space<vmem>>, vector<1x32x256xbf16>
    %9 = vector.shape_cast %8 : vector<1x32x256xbf16> to vector<32x256xbf16>
    %cst_9 = arith.constant dense<0.000000e+00> : vector<32x256xf32>
    %10 = tpu.matmul %1, %9, %cst_9 {dimension_numbers = #tpu.dot_dimension_numbers<[1], [0], [0], [1], [0, 0, 1, 1], [], []>} : vector<32x32xbf16>, vector<32x256xbf16>, vector<32x256xf32> -> vector<32x256xf32>
    %c31_i32 = arith.constant 31 : i32
    %11 = tpu.dynamic_rotate %10 by %c31_i32 dim 0 : vector<32x256xf32>, i32 -> vector<32x256xf32>
    %12 = arith.addf %7, %11 : vector<32x256xf32>
    %c2 = arith.constant 2 : index
    %c0_10 = arith.constant 0 : index
    %c0_11 = arith.constant 0 : index
    %13 = vector.load %arg2[%c2, %c0_10, %c0_11] : memref<3x32x256xbf16, #tpu.memory_space<vmem>>, vector<1x32x256xbf16>
    %14 = vector.shape_cast %13 : vector<1x32x256xbf16> to vector<32x256xbf16>
    %cst_12 = arith.constant dense<0.000000e+00> : vector<32x256xf32>
    %15 = tpu.matmul %1, %14, %cst_12 {dimension_numbers = #tpu.dot_dimension_numbers<[1], [0], [0], [1], [0, 0, 1, 1], [], []>} : vector<32x32xbf16>, vector<32x256xbf16>, vector<32x256xf32> -> vector<32x256xf32>
    %c30_i32 = arith.constant 30 : i32
    %16 = tpu.dynamic_rotate %15 by %c30_i32 dim 0 : vector<32x256xf32>, i32 -> vector<32x256xf32>
    %17 = arith.addf %12, %16 : vector<32x256xf32>
    %cst_13 = arith.constant 0.000000e+00 : f32
    %18 = vector.broadcast %cst_13 : f32 to vector<32x256xf32>
    %19 = arith.cmpf ogt, %17, %18 : vector<32x256xf32>
    %cst_14 = arith.constant 0.00999999977 : f32
    %20 = vector.broadcast %cst_14 : f32 to vector<32x256xf32>
    %21 = arith.mulf %20, %17 : vector<32x256xf32>
    %22 = arith.select %19, %17, %21 : vector<32x256xi1>, vector<32x256xf32>
    %23 = tpu.iota {dimensions = array<i32: 1>} : vector<2x16x1xi32>
    %c14_i32 = arith.constant 14 : i32
    %24 = vector.broadcast %c14_i32 : i32 to vector<2x16x1xi32>
    %25 = arith.cmpi slt, %23, %24 : vector<2x16x1xi32>
    %26 = vector.shape_cast %22 : vector<32x256xf32> to vector<2x16x256xf32>
    %cst_15 = arith.constant 0xFF800000 : f32
    %27 = vector.shape_cast %25 : vector<2x16x1xi1> to vector<2x16x1xi1>
    %28 = vector.broadcast %27 : vector<2x16x1xi1> to vector<2x16x256xi1>
    %29 = vector.broadcast %cst_15 : f32 to vector<2x16x256xf32>
    %30 = arith.select %28, %26, %29 : vector<2x16x256xi1>, vector<2x16x256xf32>
    %cst_16 = arith.constant dense<0xFF800000> : vector<2x256xf32>
    %31 = vector.multi_reduction <maximumf>, %30, %cst_16 [1] : vector<2x16x256xf32> to vector<2x256xf32>
    %32 = vector.shape_cast %31 : vector<2x256xf32> to vector<2x1x256xf32>
    %c0_17 = arith.constant 0 : index
    %c0_18 = arith.constant 0 : index
    %c0_19 = arith.constant 0 : index
    %33 = vector.load %arg4[%c0_17, %c0_18, %c0_19] : memref<2x1x256xf32, #tpu.memory_space<vmem>>, vector<2x1x256xf32>
    tpu.vector_store %arg4[%c0_17, %c0_18, %c0_19], %32 {strides = array<i32>} : memref<2x1x256xf32, #tpu.memory_space<vmem>>, vector<2x1x256xf32>,
    return
  }
  func.func @transform_0(%arg0: i32) -> (i32, i32, i32) {
    %c0_i32 = arith.constant 0 : i32
    %c0_i32_0 = arith.constant 0 : i32
    %c0_i32_1 = arith.constant 0 : i32
    return %arg0, %c0_i32, %c0_i32_0 : i32, i32, i32
  }
  func.func @transform_1(%arg0: i32) -> (i32, i32, i32) {
    %c0_i32 = arith.constant 0 : i32
    %c0_i32_0 = arith.constant 0 : i32
    %c0_i32_1 = arith.constant 0 : i32
    %c0_i32_2 = arith.constant 0 : i32
    return %c0_i32, %c0_i32_0, %c0_i32_1 : i32, i32, i32
  }
  func.func @transform_2(%arg0: i32) -> (i32, i32) {
    %c0_i32 = arith.constant 0 : i32
    %c0_i32_0 = arith.constant 0 : i32
    %c0_i32_1 = arith.constant 0 : i32
    return %c0_i32, %c0_i32_0 : i32, i32
  }
  func.func @transform_3(%arg0: i32) -> (i32, i32, i32) {
    %c0_i32 = arith.constant 0 : i32
    %c0_i32_0 = arith.constant 0 : i32
    %c0_i32_1 = arith.constant 0 : i32
    return %arg0, %c0_i32, %c0_i32_0 : i32, i32, i32
  }
}

</mosaic_0001>

<bundles_post_ra>
// kernel: cnn_bert_head.1
= control target key start
LH: loop header
LB: loop body
LE: loop exit
PB: predicated region body
PF: predicated region fallthrough
CT: control target
= control target key end

     0   :  { %v508_v1 = vmov 0   ;;  %vm54_vm0 = vcmask 261120   ;;  %v115_v15 = vlaneseq  ;;  %s665_s1 = inlined_call_operand.vmem [shape: bf16[3,32,256], index: 1, kind: input, shape index: {}]   ;;  %s666_s0 = inlined_call_operand.vmem [shape: bf16[2,16,32], index: 0, kind: input, shape index: {}]   ;;  %s667_s2 = inlined_call_operand.vmem [shape: f32[1,256], index: 2, kind: input, shape index: {}]   ;;  %s668_s3 = inlined_call_operand.vmem [shape: f32[2,1,256], index: 3, kind: output, shape index: {}]  }
   0x1   :  { %v488_v0 = vld [vmem:[%s665_s1 + $0x4] ss:$8 sps:$4 sm:$0xff]   ;;  %93 = vmatprep.mubr.bf16.mxu0 %v508_v1  ;;  %103 = vmatprep.mubr.bf16.mxu1 %v508_v1  ;;  %v490_v2 = vld [vmem:[%s665_s1] ss:$8 sps:$4 sm:$0xff]   ;;  %v491_v3 = vld [vmem:[%s665_s1 + $0x14] ss:$8 sps:$4 sm:$0xff]  }
   0x2   :  { %61 = vmatprep.subr.bf16.mxu0 %v488_v0  ;;  %482 = vmatprep.subr.bf16.mxu1 %v488_v0  ;;  %v493_v4 = vld [vmem:[%s665_s1 + $0x10] ss:$8 sps:$4 sm:$0xff]   ;;  %v494_v5 = vld [vmem:[%s666_s0] sm:$0xff]   ;;  %v495_v6 = vld [vmem:[%s666_s0 + $0x8] sm:$0xff]   ;;  %v579_v18 = vshrl.u32 %v115_v15, 7  ;;  %vm446_vm12 = vcmp.lt.s32.totalorder %v115_v15, 256 }
   0x3   :  { %62 = vmatpush1.bf16.msra.mxu0 %v490_v2  ;;  %484 = vmatpush1.bf16.msra.mxu1 %v490_v2  ;;  %v496_v7 = vld [vmem:[%s665_s1 + $0x20] ss:$8 sps:$4 sm:$0xff]   ;;  %v498_v8 = vld [vmem:[%s665_s1 + $0x24] ss:$8 sps:$4 sm:$0xff]   ;;  %v504_v11 = vld [vmem:[%s665_s1 + $0x34] ss:$8 sps:$4 sm:$0xff]  }
   0x4   :  { %63 = vmatprep.subr.bf16.mxu0 %v491_v3  ;;  %483 = vmatprep.subr.bf16.mxu1 %v491_v3  ;;  %v499_v9 = vld [vmem:[%s665_s1 + $0x40] ss:$8 sps:$4 sm:$0xff]   ;;  %v501_v10 = vld [vmem:[%s665_s1 + $0x44] ss:$8 sps:$4 sm:$0xff]   ;;  %v507_v12 = vld [vmem:[%s665_s1 + $0x54] ss:$8 sps:$4 sm:$0xff]  }
   0x5   :  { %v502_v13 = vld [vmem:[%s665_s1 + $0x30] ss:$8 sps:$4 sm:$0xff]   ;;  %v121_v25 = vsub.s32 1, %v579_v18  ;;  %v19_v26 = vld [vmem:[%s667_s2] sm:$0x3]  ;;  %v117_v27 = vsub.s32 0, %v579_v18 }
   0x6   :  { %v505_v14 = vld [vmem:[%s665_s1 + $0x50] ss:$8 sps:$4 sm:$0xff]   ;;  %vm221_vm1 = vcmp.lt.s32.totalorder %v579_v18, 7  ;;  %vm324_vm2 = vcmp.lt.s32.totalorder %v579_v18, 6  ;;  %v600_v43 = vadd.s32 8, %v579_v18 }
   0x7   :  { %64 = vmatpush1.bf16.msra.mxu0 %v493_v4  ;;  %485 = vmatpush1.bf16.msra.mxu1 %v493_v4  ;;  %v122_v30 = vrot.slane %v19_v26, %v121_v25  ;;  %v118_v34 = vrot.slane %v19_v26, %v117_v27 }
   0x8   :  { %158 = vmatprep.subr.bf16.mxu1 %v498_v8  ;;  %263 = vmatprep.subr.bf16.mxu0 %v501_v10  ;;  %vm367_vm3 = vcmp.lt.s32.totalorder %v600_v43, 14 }
   0xa   :  { %460 = vmatmul.mubr.msk.bf16.vlgmr.msra.gmra.mrb[0].mxu0 %vm54_vm0, %v494_v5  ;;  %461 = vmatmul.mubr.msk.bf16.vlgmr.msra.gmra.mrb[0].mxu1 %vm54_vm0, %v495_v6 }
   0xb   :  { %159 = vmatpush1.bf16.msra.mxu1 %v496_v7  ;;  %264 = vmatpush1.bf16.msra.mxu0 %v499_v9 }
   0xc   :  { %160 = vmatprep.subr.bf16.mxu1 %v504_v11  ;;  %265 = vmatprep.subr.bf16.mxu0 %v507_v12 }
   0xd   :  { %190 = vmatprep.mubr.bf16.mxu1 %v508_v1  ;;  %295 = vmatprep.mubr.bf16.mxu0 %v508_v1 }
   0xf   :  { %161 = vmatpush1.bf16.msra.mxu1 %v502_v13  ;;  %266 = vmatpush1.bf16.msra.mxu0 %v505_v14 }
  0x12   :  { %470 = vmatmul.mubr.msk.bf16.vlgmr.msra.gmra.mrb[4].mxu1 %vm54_vm0, %v494_v5  ;;  %480 = vmatmul.mubr.msk.bf16.vlgmr.msra.gmra.mrb[4].mxu0 %vm54_vm0, %v494_v5 }
  0x13   :  { %200 = vmatprep.mubr.bf16.mxu1 %v508_v1  ;;  %305 = vmatprep.mubr.bf16.mxu0 %v508_v1 }
  0x1a   :  { %471 = vmatmul.mubr.msk.bf16.gmra.mrb[8].mxu1 %vm54_vm0, %v495_v6  ;;  %481 = vmatmul.mubr.msk.bf16.gmra.mrb[8].mxu0 %vm54_vm0, %v495_v6 }
  0xdd   :  { %v95_v16 = vpop.f32.mrb[0].mxu0  ;;  %v105_v17 = vpop.f32.mrb[0].mxu1 }
  0xde   :  { %v97_v19 = vpop.f32.mrb[1].mxu0  ;;  %v107_v20 = vpop.f32.mrb[1].mxu1  ;;  %v125_v44 = vadd.f32 %v118_v34, %v95_v16  ;;  %v129_v54 = vadd.f32 %v118_v34, %v105_v17 }
  0xdf   :  { %v99_v21 = vpop.f32.mrb[2].mxu0  ;;  %v109_v22 = vpop.f32.mrb[2].mxu1  ;;  %v126_v48 = vadd.f32 %v122_v30, %v97_v19  ;;  %v130_v56 = vadd.f32 %v122_v30, %v107_v20 }
  0xe0   :  { %v101_v23 = vpop.f32.mrb[3].mxu0  ;;  %v111_v24 = vpop.f32.mrb[3].mxu1  ;;  %v127_v57 = vadd.f32 %v118_v34, %v99_v21  ;;  %v131_v58 = vadd.f32 %v118_v34, %v109_v22 }
  0xe1   :  { %v128_v62 = vadd.f32 %v122_v30, %v101_v23  ;;  %v132_v13 = vadd.f32 %v122_v30, %v111_v24 }
  0xe5   :  { %v586_v28 = vpop.f32.mrb[4].mxu1  ;;  %v588_v29 = vpop.f32.mrb[4].mxu0 }
  0xe6   :  { %v316_v31 = vrot.slane %v588_v29, 2  ;;  %v591_v32 = vpop.f32.mrb[5].mxu1  ;;  %v593_v33 = vpop.f32.mrb[5].mxu0  ;;  %v211_v38 = vrot.slane %v586_v28, 1 }
  0xe7   :  { %v317_v35 = vrot.slane %v593_v33, 2  ;;  %v196_v36 = vpop.f32.mrb[6].mxu1  ;;  %v301_v37 = vpop.f32.mrb[6].mxu0  ;;  %v212_v45 = vrot.slane %v591_v32, 1 }
  0xe8   :  { %v213_v39 = vrot.slane %v196_v36, 1  ;;  %v318_v40 = vrot.slane %v301_v37, 2  ;;  %v198_v41 = vpop.f32.mrb[7].mxu1  ;;  %v303_v42 = vpop.f32.mrb[7].mxu0 }
  0xe9   :  { %v214_v46 = vrot.slane %v198_v41, 1  ;;  %v319_v47 = vrot.slane %v303_v42, 2 }
  0xea   :  { %v226_v49 = vsel %vm221_vm1, %v211_v38, %v213_v39  ;;  %v329_v50 = vsel %vm324_vm2, %v316_v31, %v318_v40 }
  0xeb   :  { %v230_v51 = vadd.f32 %v226_v49, %v125_v44  ;;  %v227_v52 = vsel %vm221_vm1, %v212_v45, %v214_v46  ;;  %v330_v53 = vsel %vm324_vm2, %v317_v35, %v319_v47 }
  0xec   :  { %v231_v55 = vadd.f32 %v227_v52, %v126_v48 }
  0xed   :  { %v333_v59 = vadd.f32 %v329_v50, %v230_v51  ;;  %v202_v60 = vpop.f32.mrb[8].mxu1  ;;  %v307_v61 = vpop.f32.mrb[8].mxu0 }
  0xee   :  { %v334_v63 = vadd.f32 %v330_v53, %v231_v55  ;;  %v215_v0 = vrot.slane %v202_v60, 1  ;;  %v320_v1 = vrot.slane %v307_v61, 2  ;;  %v204_v2 = vpop.f32.mrb[9].mxu1  ;;  %v309_v3 = vpop.f32.mrb[9].mxu0 }
  0xef   :  { %vm341_vm4 = vcmp.gt.f32.partialorder %v333_v59, 0.0  ;;  %v349_v4 = vmul.f32 0.01, %v333_v59  ;;  %v216_v5 = vrot.slane %v204_v2, 1  ;;  %v321_v6 = vrot.slane %v309_v3, 2  ;;  %v206_v7 = vpop.f32.mrb[10].mxu1 }
  0xf0   :  { %vm342_vm5 = vcmp.gt.f32.partialorder %v334_v63, 0.0  ;;  %v350_v8 = vmul.f32 0.01, %v334_v63  ;;  %v224_v9 = vsel %vm221_vm1, %v213_v39, %v215_v0  ;;  %v327_v10 = vsel %vm324_vm2, %v318_v40, %v320_v1  ;;  %v311_v11 = vpop.f32.mrb[10].mxu0  ;;  %v208_v12 = vpop.f32.mrb[11].mxu1 }
  0xf1   :  { %v232_v14 = vadd.f32 %v224_v9, %v127_v57  ;;  %v225_v16 = vsel %vm221_vm1, %v214_v46, %v216_v5  ;;  %v328_v17 = vsel %vm324_vm2, %v319_v47, %v321_v6  ;;  %v313_v19 = vpop.f32.mrb[11].mxu0  ;;  %v357_v20 = vsel %vm341_vm4, %v333_v59, %v349_v4 }
  0xf2   :  { %v233_v21 = vadd.f32 %v225_v16, %v128_v62  ;;  %v217_v22 = vrot.slane %v206_v7, 1  ;;  %v322_v23 = vrot.slane %v311_v11, 2  ;;  %v358_v25 = vsel %vm342_vm5, %v334_v63, %v350_v8 }
  0xf3   :  { %v335_v26 = vadd.f32 %v327_v10, %v232_v14  ;;  %v218_v27 = vrot.slane %v208_v12, 1  ;;  %v323_v28 = vrot.slane %v313_v19, 2 }
  0xf4   :  { %v336_v34 = vadd.f32 %v328_v17, %v233_v21  ;;  %v222_v24 = vsel %vm221_vm1, %v215_v0, %v217_v22  ;;  %v228_v30 = vsel %vm221_vm1, %v217_v22, %v211_v38  ;;  %v325_v36 = vsel %vm324_vm2, %v320_v1, %v322_v23 }
  0xf5   :  { %vm343_vm6 = vcmp.gt.f32.partialorder %v335_v26, 0.0  ;;  %v351_v37 = vmul.f32 0.01, %v335_v26  ;;  %v234_v39 = vadd.f32 %v222_v24, %v129_v54  ;;  %v236_v40 = vadd.f32 %v228_v30, %v131_v58 }
  0xf6   :  { %vm344_vm7 = vcmp.gt.f32.partialorder %v336_v34, 0.0  ;;  %v352_v41 = vmul.f32 0.01, %v336_v34  ;;  %v331_v42 = vsel %vm324_vm2, %v322_v23, %v316_v31  ;;  %v223_v44 = vsel %vm221_vm1, %v216_v5, %v218_v27 }
  0xf7   :  { %v359_v46 = vsel %vm343_vm6, %v335_v26, %v351_v37  ;;  %v337_v47 = vadd.f32 %v325_v36, %v234_v39  ;;  %v339_v38 = vadd.f32 %v331_v42, %v236_v40  ;;  %v229_v48 = vsel %vm221_vm1, %v218_v27, %v212_v45 }
  0xf8   :  { %v374_v49 = vsel %vm367_vm3, %v359_v46, -inf  ;;  %v360_v50 = vsel %vm344_vm7, %v336_v34, %v352_v41  ;;  %v235_v51 = vadd.f32 %v223_v44, %v130_v56  ;;  %v237_v29 = vadd.f32 %v229_v48, %v132_v13 }
  0xf9   :  { %v380_v52 = vmax.f32 %v357_v20, %v374_v49  ;;  %v375_v31 = vsel %vm367_vm3, %v360_v50, -inf  ;;  %vm345_vm8 = vcmp.gt.f32.partialorder %v337_v47, 0.0  ;;  %vm347_vm9 = vcmp.gt.f32.partialorder %v339_v38, 0.0 }
  0xfa   :  { %v387_v53 = vmax.f32 %v358_v25, %v375_v31  ;;  %v353_v54 = vmul.f32 0.01, %v337_v47  ;;  %v355_v55 = vmul.f32 0.01, %v339_v38  ;;  %v326_v32 = vsel %vm324_vm2, %v321_v6, %v323_v28 }
  0xfb   :  { %v381_v57 = vrot.slane %v380_v52, 4  ;;  %v509_v45 = vmov 1966171168   ;;  %v332_v56 = vsel %vm324_vm2, %v323_v28, %v317_v35  ;;  %v338_v59 = vadd.f32 %v326_v32, %v235_v51 }
  0xfc   :  { %v414_v58 = vunpack.c.l.s4 %v509_v45  ;;  %v388_v60 = vrot.slane %v387_v53, 4  ;;  %v361_v61 = vsel %vm345_vm8, %v337_v47, %v353_v54  ;;  %v363_v62 = vsel %vm347_vm9, %v339_v38, %v355_v55 }
  0xfd   :  { %v340_v63 = vadd.f32 %v332_v56, %v237_v29  ;;  %v382_v0 = vmax.f32 %v380_v52, %v381_v57  ;;  %v378_v1 = vsel %vm367_vm3, %v363_v62, -inf  ;;  %vm346_vm10 = vcmp.gt.f32.partialorder %v338_v59, 0.0 }
  0xfe   :  { %v354_v2 = vmul.f32 0.01, %v338_v59  ;;  %v389_v3 = vmax.f32 %v387_v53, %v388_v60  ;;  %v394_v4 = vmax.f32 %v361_v61, %v378_v1  ;;  %v415_v12 = vunpack.c.0.s8 %v414_v58 }
  0xff   :  { %vm348_vm11 = vcmp.gt.f32.partialorder %v340_v63, 0.0  ;;  %v356_v5 = vmul.f32 0.01, %v340_v63  ;;  %v383_v6 = vrot.slane %v382_v0, 2 }
 0x100   :  { %v362_v33 = vsel %vm346_vm10, %v338_v59, %v354_v2  ;;  %v390_v7 = vrot.slane %v389_v3, 2  ;;  %v395_v8 = vrot.slane %v394_v4, 4  ;;  %v418_v23 = vsub.s32 %v415_v12, %v579_v18 }
 0x101   :  { %v364_v35 = vsel %vm348_vm11, %v340_v63, %v356_v5  ;;  %v384_v9 = vmax.f32 %v382_v0, %v383_v6 }
 0x102   :  { %v379_v10 = vsel %vm367_vm3, %v364_v35, -inf  ;;  %v391_v11 = vmax.f32 %v389_v3, %v390_v7  ;;  %v396_v13 = vmax.f32 %v394_v4, %v395_v8 }
 0x103   :  { %v401_v14 = vmax.f32 %v362_v33, %v379_v10  ;;  %v385_v16 = vrot.slane %v384_v9, 1 }
 0x104   :  { %v392_v17 = vrot.slane %v391_v11, 1  ;;  %v397_v19 = vrot.slane %v396_v13, 2 }
 0x105   :  { %v402_v20 = vrot.slane %v401_v14, 4  ;;  %v386_v21 = vmax.f32 %v384_v9, %v385_v16 }
 0x106   :  { %v393_v22 = vmax.f32 %v391_v11, %v392_v17  ;;  %v398_v25 = vmax.f32 %v396_v13, %v397_v19 }
 0x107   :  { %v403_v26 = vmax.f32 %v401_v14, %v402_v20 }
 0x108   :  { %v412_v27 = vcombine.low %v386_v21, %v393_v22  ;;  %v399_v28 = vrot.slane %v398_v25, 1 }
 0x109   :  { %v404_v34 = vrot.slane %v403_v26, 2 }
 0x10a   :  { %v419_v24 = vrot.slane %v412_v27, %v418_v23  ;;  %v400_v36 = vmax.f32 %v398_v25, %v399_v28 }
 0x10b   :  { %v405_v43 = vmax.f32 %v403_v26, %v404_v34 }
 0x10c   :  { %v426_v30 = vrot.slane %v419_v24, %v418_v23 }
 0x10d   :  { %v406_v37 = vrot.slane %v405_v43, 1 }
 0x10e   :  { %448 = vst.msk [vmem:[%s668_s3] sm:$0x3] %vm446_vm12, %v426_v30 }
 0x10f   :  { %v407_v39 = vmax.f32 %v405_v43, %v406_v37 }
 0x111   :  { %v427_v40 = vcombine.low %v400_v36, %v407_v39 }
 0x113   :  { %v434_v41 = vrot.slane %v427_v40, %v418_v23 }
 0x115   :  { %v441_v18 = vrot.slane %v434_v41, %v418_v23 }
 0x117   :  { %449 = vst.msk [vmem:[%s668_s3 + $0x2] sm:$0x3] %vm446_vm12, %v441_v18 }

</bundles_post_ra>
